<compile_context>
chip_gen: v7x
topology: tpu7x:2x2x1
jax: 0.10.0
libtpu: 0.0.40
codegen_flags: <defaults>
</compile_context>

<pallas_src>
import jax
import jax.numpy as jnp
from jax.experimental import pallas as pl
from jax.experimental.pallas import tpu as pltpu

IN_FEATURES = 400
OUT_FEATURES = 3
DEFAULT_TILE_B = 1024  # (1024, 512-pad) f32 tile = 2 MiB, x2 buffers = 4 MiB: safe on v5e/v6e/v7x


def _round_up(n, m):
    return ((n + m - 1) // m) * m


def linear_kernel(x_ref, w_ref, b_ref, o_ref):
    # x_ref: (TILE_B, 400), w_ref: (400, 3), b_ref: (1, 3), o_ref: (TILE_B, 3)
    acc = jnp.dot(x_ref[...], w_ref[...], preferred_element_type=jnp.float32)
    o_ref[...] = (acc + b_ref[...]).astype(o_ref.dtype)


def linear_approximator(x, w_t, b, *, tile_b=DEFAULT_TILE_B):
    """x: (B, 400) f32, w_t: (400, 3) f32 (already transposed), b: (3,) f32."""
    B = x.shape[0]

    # Tile size: multiple of 8 sublanes, never larger than the (padded) batch.
    tb = min(_round_up(tile_b, 8), _round_up(B, 8))
    # Pad batch so the grid divides evenly (no partial / masked last tile).
    B_pad = _round_up(B, tb)
    if B_pad != B:
        x = jnp.pad(x, ((0, B_pad - B), (0, 0)))

    b2d = b.reshape(1, OUT_FEATURES)
    grid = (B_pad // tb,)

    out = pl.pallas_call(
        linear_kernel,
        out_shape=jax.ShapeDtypeStruct((B_pad, OUT_FEATURES), x.dtype),
        grid_spec=pl.GridSpec(
            grid=grid,
            in_specs=[
                # X: one batch tile per grid step (pipelined / double-buffered).
                pl.BlockSpec((tb, IN_FEATURES), lambda i: (i, 0)),
                # W^T and bias: constant block -> resident in VMEM across steps.
                pl.BlockSpec((IN_FEATURES, OUT_FEATURES), lambda i: (0, 0)),
                pl.BlockSpec((1, OUT_FEATURES), lambda i: (0, 0)),
            ],
            out_specs=pl.BlockSpec((tb, OUT_FEATURES), lambda i: (i, 0)),
        ),
        compiler_params=pltpu.CompilerParams(
            # Batch tiles are independent -> megacore sharding on v7x.
            dimension_semantics=("parallel",),
        ),
        cost_estimate=pl.CostEstimate(
            flops=2 * B_pad * IN_FEATURES * OUT_FEATURES,
            transcendentals=0,
            bytes_accessed=(
                B_pad * IN_FEATURES * 4
                + IN_FEATURES * OUT_FEATURES * 4
                + OUT_FEATURES * 4
                + B_pad * OUT_FEATURES * 4
            ),
        ),
    )(x, w_t, b2d)

    return out[:B] if B_pad != B else out


def init_params(key):
    """Deterministic init mirroring torch.nn.Linear(400, 3) default init
    (uniform in [-1/sqrt(in_features), 1/sqrt(in_features)])."""
    kw, kb = jax.random.split(key)
    bound = 1.0 / jnp.sqrt(jnp.float32(IN_FEATURES))
    # PyTorch stores weight as (out, in); we keep the transposed (in, out) form.
    w = jax.random.uniform(
        kw, (OUT_FEATURES, IN_FEATURES), jnp.float32, -bound, bound
    )
    b = jax.random.uniform(kb, (OUT_FEATURES,), jnp.float32, -bound, bound)
    return w.T, b  # (400, 3), (3,)


if __name__ == "__main__":
    key = jax.random.PRNGKey(0)
    k_x, k_p = jax.random.split(key)

    batch = 8
    x = jax.random.normal(k_x, (batch, IN_FEATURES), jnp.float32)
    w_t, b = init_params(k_p)

    out = linear_approximator(x, w_t, b)
    jax.block_until_ready(out)

    # Sanity check against pure-JAX reference.
    ref = x @ w_t + b[None, :]
    assert out.shape == (batch, OUT_FEATURES)
    assert jnp.allclose(out, ref, atol=1e-4, rtol=1e-4)

    print("KERNEL_OK")
</pallas_src>

<mosaic_0001>
module attributes {stable_mosaic.version = 11 : i64} {
  func.func @linear_kernel(%arg0: i32, %arg1: memref<8x400xf32, #tpu.memory_space<vmem>>, %arg2: memref<400x3xf32, #tpu.memory_space<vmem>>, %arg3: memref<1x3xf32, #tpu.memory_space<vmem>>, %arg4: memref<8x3xf32, #tpu.memory_space<vmem>>) attributes {dimension_semantics = [#tpu.dimension_semantics<parallel>], iteration_bounds = array<i64: 1>, scalar_prefetch = 0 : i64, scratch_operands = 0 : i64, tpu.core_type = #tpu.core_type<tc>, window_params = [{transform_indices = @transform_0, window_bounds = array<i64: 8, 400>}, {pipeline_mode = #tpu.pipeline_mode<synchronous>, transform_indices = @transform_1, window_bounds = array<i64: 400, 3>}, {pipeline_mode = #tpu.pipeline_mode<synchronous>, transform_indices = @transform_2, window_bounds = array<i64: 1, 3>}, {transform_indices = @transform_3, window_bounds = array<i64: 8, 3>}]} {
    %c0 = arith.constant 0 : index
    %c0_0 = arith.constant 0 : index
    %0 = vector.load %arg1[%c0, %c0_0] : memref<8x400xf32, #tpu.memory_space<vmem>>, vector<8x400xf32>
    %c0_1 = arith.constant 0 : index
    %c0_2 = arith.constant 0 : index
    %1 = vector.load %arg2[%c0_1, %c0_2] : memref<400x3xf32, #tpu.memory_space<vmem>>, vector<400x3xf32>
    %cst = arith.constant dense<0.000000e+00> : vector<8x3xf32>
    %2 = tpu.matmul %0, %1, %cst {dimension_numbers = #tpu.dot_dimension_numbers<[1], [0], [0], [1], [0, 0, 1, 1], [], []>} : vector<8x400xf32>, vector<400x3xf32>, vector<8x3xf32> -> vector<8x3xf32>
    %c0_3 = arith.constant 0 : index
    %c0_4 = arith.constant 0 : index
    %3 = vector.load %arg3[%c0_3, %c0_4] : memref<1x3xf32, #tpu.memory_space<vmem>>, vector<1x3xf32>
    %4 = vector.broadcast %3 : vector<1x3xf32> to vector<8x3xf32>
    %5 = arith.addf %2, %4 : vector<8x3xf32>
    %c0_5 = arith.constant 0 : index
    %c0_6 = arith.constant 0 : index
    %6 = vector.load %arg4[%c0_5, %c0_6] : memref<8x3xf32, #tpu.memory_space<vmem>>, vector<8x3xf32>
    tpu.vector_store %arg4[%c0_5, %c0_6], %5 {strides = array<i32>} : memref<8x3xf32, #tpu.memory_space<vmem>>, vector<8x3xf32>,
    return
  }
  func.func @transform_0(%arg0: i32) -> (i32, i32) {
    %c0_i32 = arith.constant 0 : i32
    %c0_i32_0 = arith.constant 0 : i32
    return %arg0, %c0_i32 : i32, i32
  }
  func.func @transform_1(%arg0: i32) -> (i32, i32) {
    %c0_i32 = arith.constant 0 : i32
    %c0_i32_0 = arith.constant 0 : i32
    %c0_i32_1 = arith.constant 0 : i32
    return %c0_i32, %c0_i32_0 : i32, i32
  }
  func.func @transform_2(%arg0: i32) -> (i32, i32) {
    %c0_i32 = arith.constant 0 : i32
    %c0_i32_0 = arith.constant 0 : i32
    %c0_i32_1 = arith.constant 0 : i32
    return %c0_i32, %c0_i32_0 : i32, i32
  }
  func.func @transform_3(%arg0: i32) -> (i32, i32) {
    %c0_i32 = arith.constant 0 : i32
    %c0_i32_0 = arith.constant 0 : i32
    return %arg0, %c0_i32 : i32, i32
  }
}

</mosaic_0001>

<bundles_post_ra>
// kernel: tpu_custom_call.1
= control target key start
LH: loop header
LB: loop body
LE: loop exit
PB: predicated region body
PF: predicated region fallthrough
CT: control target
= control target key end

     0   :  { %v322_v2 = vmov 0.0|0.0   ;;  %vm75_vm0 = vcmask 130048   ;;  %vm219_vm1 = vcmask 23552   ;;  %s521_s1 = inlined_call_operand.vmem [shape: f32[400,3], index: 1, kind: input, shape index: {}]   ;;  %s522_s0 = inlined_call_operand.vmem [shape: f32[8,400], index: 0, kind: input, shape index: {}]   ;;  %s523_s2 = inlined_call_operand.vmem [shape: f32[1,3], index: 2, kind: input, shape index: {}]   ;;  %s524_s3 = inlined_call_operand.vmem [shape: f32[8,3], index: 3, kind: output, shape index: {}]  }
   0x1   :  { %v34_v0 = vld [vmem:[%s521_s1 + $0x80] sm:$0xff]  ;;  %v35_v1 = vld [vmem:[%s521_s1 + $0x88] sm:$0xff]  ;;  %294 = vmatprep.subr.bf16.mxu1 %v322_v2  ;;  %v36_v10 = vld [vmem:[%s521_s1 + $0x90] sm:$0xff] }
   0x2   :  { %v18_v3 = vld [vmem:[%s521_s1] sm:$0xff]  ;;  %v262_v4 = vpack.c.bf16 %v35_v1, %v34_v0  ;;  %v19_v5 = vld [vmem:[%s521_s1 + $0x8] sm:$0xff]  ;;  %v37_v11 = vld [vmem:[%s521_s1 + $0x98] sm:$0xff] }
   0x3   :  { %v50_v6 = vld [vmem:[%s521_s1 + $0x100] sm:$0xff]  ;;  %v51_v7 = vld [vmem:[%s521_s1 + $0x108] sm:$0xff]  ;;  %v264_v8 = vpack.c.bf16 %v19_v5, %v18_v3  ;;  %v20_v12 = vld [vmem:[%s521_s1 + $0x10] sm:$0xff]  ;;  %v266_v13 = vpack.c.bf16 %v37_v11, %v36_v10 }
   0x4   :  { %v295_v9 = vpack.c.bf16 %v51_v7, %v50_v6  ;;  %263 = vmatprep.subr.bf16.mxu0 %v262_v4  ;;  %v21_v14 = vld [vmem:[%s521_s1 + $0x18] sm:$0xff]  ;;  %v52_v15 = vld [vmem:[%s521_s1 + $0x110] sm:$0xff]  ;;  %v38_v19 = vld [vmem:[%s521_s1 + $0xa0] sm:$0xff] }
   0x5   :  { %v53_v16 = vld [vmem:[%s521_s1 + $0x118] sm:$0xff]  ;;  %265 = vmatpush3.bf16.msra.mxu0 %v264_v8  ;;  %v268_v17 = vpack.c.bf16 %v21_v14, %v20_v12  ;;  %v39_v20 = vld [vmem:[%s521_s1 + $0xa8] sm:$0xff]  ;;  %v22_v21 = vld [vmem:[%s521_s1 + $0x20] sm:$0xff] }
   0x6   :  { %296 = vmatpush1.bf16.msra.mxu1 %v295_v9  ;;  %v298_v18 = vpack.c.bf16 %v53_v16, %v52_v15  ;;  %267 = vmatprep.subr.bf16.mxu0 %v266_v13  ;;  %v270_v22 = vpack.c.bf16 %v39_v20, %v38_v19  ;;  %v23_v23 = vld [vmem:[%s521_s1 + $0x28] sm:$0xff]  ;;  %v54_v24 = vld [vmem:[%s521_s1 + $0x120] sm:$0xff]  ;;  %v40_v26 = vld [vmem:[%s521_s1 + $0xb0] sm:$0xff] }
   0x7   :  { %297 = vmatprep.subr.bf16.mxu1 %v322_v2  ;;  %v55_v25 = vld [vmem:[%s521_s1 + $0x128] sm:$0xff]  ;;  %v41_v27 = vld [vmem:[%s521_s1 + $0xb8] sm:$0xff]  ;;  %v272_v28 = vpack.c.bf16 %v23_v23, %v22_v21  ;;  %v24_v30 = vld [vmem:[%s521_s1 + $0x30] sm:$0xff] }
   0x8   :  { %v301_v29 = vpack.c.bf16 %v55_v25, %v54_v24  ;;  %v274_v31 = vpack.c.bf16 %v41_v27, %v40_v26  ;;  %v25_v32 = vld [vmem:[%s521_s1 + $0x38] sm:$0xff]  ;;  %v56_v33 = vld [vmem:[%s521_s1 + $0x130] sm:$0xff]  ;;  %v42_v35 = vld [vmem:[%s521_s1 + $0xc0] sm:$0xff] }
   0x9   :  { %269 = vmatpush3.bf16.msra.mxu0 %v268_v17  ;;  %v57_v34 = vld [vmem:[%s521_s1 + $0x138] sm:$0xff]  ;;  %v43_v36 = vld [vmem:[%s521_s1 + $0xc8] sm:$0xff]  ;;  %v276_v37 = vpack.c.bf16 %v25_v32, %v24_v30  ;;  %v26_v39 = vld [vmem:[%s521_s1 + $0x40] sm:$0xff] }
   0xa   :  { %299 = vmatpush1.bf16.msra.mxu1 %v298_v18  ;;  %271 = vmatprep.subr.bf16.mxu0 %v270_v22  ;;  %v304_v38 = vpack.c.bf16 %v57_v34, %v56_v33  ;;  %v278_v40 = vpack.c.bf16 %v43_v36, %v42_v35  ;;  %v27_v41 = vld [vmem:[%s521_s1 + $0x48] sm:$0xff]  ;;  %v58_v42 = vld [vmem:[%s521_s1 + $0x140] sm:$0xff]  ;;  %v44_v44 = vld [vmem:[%s521_s1 + $0xd0] sm:$0xff] }
   0xb   :  { %300 = vmatprep.subr.bf16.mxu1 %v322_v2  ;;  %v59_v43 = vld [vmem:[%s521_s1 + $0x148] sm:$0xff]  ;;  %v45_v45 = vld [vmem:[%s521_s1 + $0xd8] sm:$0xff]  ;;  %v280_v46 = vpack.c.bf16 %v27_v41, %v26_v39  ;;  %v28_v48 = vld [vmem:[%s521_s1 + $0x50] sm:$0xff] }
   0xc   :  { %v307_v47 = vpack.c.bf16 %v59_v43, %v58_v42  ;;  %v29_v49 = vld [vmem:[%s521_s1 + $0x58] sm:$0xff]  ;;  %v15_v50 = vld [vmem:[%s522_s0 + $0x8] sm:$0xff]  ;;  %v282_v51 = vpack.c.bf16 %v45_v45, %v44_v44  ;;  %v60_v52 = vld [vmem:[%s521_s1 + $0x150] sm:$0xff] }
   0xd   :  { %273 = vmatpush3.bf16.msra.mxu0 %v272_v28  ;;  %v61_v53 = vld [vmem:[%s521_s1 + $0x158] sm:$0xff]  ;;  %v46_v55 = vld [vmem:[%s521_s1 + $0xe0] sm:$0xff]  ;;  %v47_v56 = vld [vmem:[%s521_s1 + $0xe8] sm:$0xff]  ;;  %143 = vmatprep.mubr.f32.mxu0 %v15_v50  ;;  %v284_v57 = vpack.c.bf16 %v29_v49, %v28_v48 }
   0xe   :  { %302 = vmatpush1.bf16.msra.mxu1 %v301_v29  ;;  %275 = vmatprep.subr.bf16.mxu0 %v274_v31  ;;  %v17_v54 = vld [vmem:[%s522_s0 + $0x18] sm:$0xff]  ;;  %v310_v58 = vpack.c.bf16 %v61_v53, %v60_v52  ;;  %v30_v59 = vld [vmem:[%s521_s1 + $0x60] sm:$0xff]  ;;  %v286_v60 = vpack.c.bf16 %v47_v56, %v46_v55  ;;  %v31_v61 = vld [vmem:[%s521_s1 + $0x68] sm:$0xff] }
   0xf   :  { %303 = vmatprep.subr.bf16.mxu1 %v322_v2  ;;  %226 = vmatprep.mubr.msk.f32.mxu1 %vm75_vm0, %v17_v54  ;;  %v62_v62 = vld [vmem:[%s521_s1 + $0x160] sm:$0xff]  ;;  %v63_v63 = vld [vmem:[%s521_s1 + $0x168] sm:$0xff]  ;;  %v48_v0 = vld [vmem:[%s521_s1 + $0xf0] sm:$0xff]  ;;  %v288_v3 = vpack.c.bf16 %v31_v61, %v30_v59 }
  0x10   :  { %v49_v1 = vld [vmem:[%s521_s1 + $0xf8] sm:$0xff]  ;;  %v313_v4 = vpack.c.bf16 %v63_v63, %v62_v62  ;;  %v32_v5 = vld [vmem:[%s521_s1 + $0x70] sm:$0xff]  ;;  %v66_v12 = vld [vmem:[%s521_s1 + $0x180] sm:$0xff] }
  0x11   :  { %277 = vmatpush3.bf16.msra.mxu0 %v276_v37  ;;  %v290_v6 = vpack.c.bf16 %v49_v1, %v48_v0  ;;  %v33_v7 = vld [vmem:[%s521_s1 + $0x78] sm:$0xff]  ;;  %v64_v8 = vld [vmem:[%s521_s1 + $0x170] sm:$0xff]  ;;  %v67_v13 = vld [vmem:[%s521_s1 + $0x188] sm:$0xff] }
  0x12   :  { %305 = vmatpush1.bf16.msra.mxu1 %v304_v38  ;;  %279 = vmatprep.subr.bf16.mxu0 %v278_v40  ;;  %v65_v9 = vld [vmem:[%s521_s1 + $0x178] sm:$0xff]  ;;  %v292_v10 = vpack.c.bf16 %v33_v7, %v32_v5  ;;  %v14_v14 = vld [vmem:[%s522_s0] sm:$0xff]  ;;  %v319_v15 = vpack.c.bf16 %v67_v13, %v66_v12  ;;  %v16_v16 = vld [vmem:[%s522_s0 + $0x10] sm:$0xff] }
  0x13   :  { %306 = vmatprep.subr.bf16.mxu1 %v322_v2  ;;  %v316_v11 = vpack.c.bf16 %v65_v9, %v64_v8  ;;  %v225_v19 = vld [vmem:[%s523_s2] ss:$0 sm:$0xff] }
  0x15   :  { %281 = vmatpush3.bf16.msra.mxu0 %v280_v46 }
  0x16   :  { %308 = vmatpush1.bf16.msra.mxu1 %v307_v47  ;;  %283 = vmatprep.subr.bf16.mxu0 %v282_v51 }
  0x17   :  { %309 = vmatprep.subr.bf16.mxu1 %v322_v2 }
  0x19   :  { %285 = vmatpush3.bf16.msra.mxu0 %v284_v57 }
  0x1a   :  { %311 = vmatpush1.bf16.msra.mxu1 %v310_v58  ;;  %287 = vmatprep.subr.bf16.mxu0 %v286_v60 }
  0x1b   :  { %312 = vmatprep.subr.bf16.mxu1 %v322_v2 }
  0x1d   :  { %289 = vmatpush3.bf16.msra.mxu0 %v288_v3 }
  0x1e   :  { %314 = vmatpush1.bf16.msra.mxu1 %v313_v4  ;;  %291 = vmatprep.subr.bf16.mxu0 %v290_v6 }
  0x1f   :  { %315 = vmatprep.subr.bf16.mxu1 %v322_v2 }
  0x21   :  { %293 = vmatpush3.bf16.msra.mxu0 %v292_v10 }
  0x22   :  { %317 = vmatpush1.bf16.msra.mxu1 %v316_v11 }
  0x23   :  { %318 = vmatprep.subr.bf16.mxu1 %v322_v2 }
  0x24   :  { %144 = vmatmul.mubr.f32.vlgmr.msra.gmra.mrb[0].mxu0 %v14_v14 }
  0x26   :  { %320 = vmatpush1.bf16.msra.mxu1 %v319_v15 }
  0x29   :  { %214 = vmatmul.mubr.f32.vlgmr.msra.gmra.mrb[0].mxu1 %v16_v16 }
  0xf7   :  { %v259_v17 = vpop.f32.mrb[0].mxu0 }
  0xf8   :  { %v260_v18 = vpop.f32.mrb[1].mxu0 }
  0xf9   :  { %v261_v20 = vadd.f32 %v260_v18, %v259_v17 }
  0xfb   :  { %v146_v21 = vadd.f32 %v261_v20, %v225_v19 }
  0xfc   :  { %v215_v22 = vpop.f32.mrb[0].mxu1 }
  0xfd   :  { %v217_v23 = vpop.f32.mrb[1].mxu1  ;;  %v216_v24 = vadd.f32 %v215_v22, %v146_v21 }
  0xff   :  { %220 = vst.msk [vmem:[%s524_s3] sm:$0xff] %vm219_vm1, %v216_v24 }

</bundles_post_ra>
